<compile_context>
chip_gen: v7x
topology: tpu7x:2x2x1
jax: 0.10.0
libtpu: 0.0.40
codegen_flags: <defaults>
</compile_context>

<pallas_src>
import functools
import math

import jax
import jax.numpy as jnp
from jax.experimental import pallas as pl
from jax.experimental.pallas import tpu as pltpu

_LANE = 128


def _round_up(x, m):
    return ((x + m - 1) // m) * m


def _select_act_dtype(compute_dtype):
    """bf16 bias-add/tanh only on chips with a bf16 VPU/EUP (v6e / v7x)."""
    if jnp.dtype(compute_dtype) == jnp.dtype(jnp.float32):
        return jnp.float32
    kind = jax.devices()[0].device_kind.lower()
    if ("v6" in kind) or ("v7" in kind) or ("7x" in kind):
        return compute_dtype
    return jnp.float32


def _mlp_kernel(x_ref, w1_ref, b1_ref, w2_ref, b2_ref, w3_ref, b3_ref, o_ref,
                *, n_sub, compute_dtype, act_dtype):
    tile_m = x_ref.shape[0]
    sub_m = tile_m // n_sub
    g_sub = sub_m // _LANE

    # Hoist the resident loads / broadcast sources out of the sub-tile loop.
    w1 = w1_ref[...]
    b1 = b1_ref[...]                                  # (1, hidden) act_dtype
    w2 = w2_ref[...]
    b2 = b2_ref[...]                                  # (1, hidden) act_dtype
    w3 = w3_ref[...].reshape(1, 1, -1)                # (1, 1, hidden) f32
    b3 = b3_ref[...]                                  # (1, 1)        f32

    # Static (unrolled) loop over independent sub-tiles: lets the scheduler
    # overlap sub-tile k+1's MXU matmuls with sub-tile k's tanh (EUP).
    for s in range(n_sub):
        xs = x_ref[s * sub_m:(s + 1) * sub_m, :].astype(compute_dtype)

        # Layer 1: Linear(input_dim -> hidden) + tanh.  MXU, f32 accumulate;
        # bias-add + tanh in act_dtype (bf16 on v6e/v7x, f32 on v5e).
        h1 = jnp.dot(xs, w1, preferred_element_type=jnp.float32)
        h1 = jnp.tanh(h1.astype(act_dtype) + b1)

        # Layer 2: Linear(hidden -> hidden) + tanh.
        h2 = jnp.dot(h1.astype(compute_dtype), w2,
                     preferred_element_type=jnp.float32)
        h2 = jnp.tanh(h2.astype(act_dtype) + b2)

        # Layer 3: Linear(hidden -> 1).  N=1 would waste the MXU, so use a
        # VPU multiply + XLU lane reduce, producing a lane-dense
        # (sub_m//128, 128) block instead of a (sub_m, 1) masked-store column.
        prod = h2.astype(jnp.float32).reshape(g_sub, _LANE, -1) * w3
        out = jnp.sum(prod, axis=-1) + b3             # (g_sub, 128) f32

        o_ref[0, s * g_sub:(s + 1) * g_sub, :] = out


def discriminator_forward(x, params, *, tile_m=None,
                          compute_dtype=jnp.bfloat16, act_dtype=None):
    """x: (B, input_dim) float32 -> (B, 1) float32. Fused 3-layer MLP."""
    B, input_dim = x.shape
    hidden = params["w1"].shape[1]

    if act_dtype is None:
        act_dtype = _select_act_dtype(compute_dtype)

    # Weights are small -> wrapper cast is fine.  x stays f32 (cast in-kernel).
    w1 = params["w1"].astype(compute_dtype)
    w2 = params["w2"].astype(compute_dtype)
    b1 = params["b1"].astype(act_dtype)
    b2 = params["b2"].astype(act_dtype)
    w3 = params["w3"].astype(jnp.float32)             # (1, hidden)
    b3 = params["b3"].astype(jnp.float32)             # (1, 1)

    # ---- batch tiling ------------------------------------------------------
    B_pad = _round_up(B, _LANE)
    if tile_m is None:
        tile_m = min(512, B_pad)                      # sweep start point
        # Keep >= 2 grid steps when possible so ("parallel",) can shard the
        # batch across the two TensorCores on v7x.
        if B_pad >= 2 * _LANE:
            tile_m = min(tile_m, _round_up(pl.cdiv(B_pad, 2), _LANE))
    tile_m = max(_LANE, _round_up(min(int(tile_m), B_pad), _LANE))

    # Keep the per-step working set (double-buffered x/out tiles + resident
    # weights + f32 h1/h2 intermediates) comfortably inside the default
    # scoped-VMEM limit — matters on v7x (64 MiB physical) at large hidden.
    def _vmem_estimate(tm):
        w_bytes = ((input_dim * hidden + hidden * hidden)
                   * jnp.dtype(compute_dtype).itemsize
                   + 2 * hidden * jnp.dtype(act_dtype).itemsize
                   + (hidden + 1) * 4)
        return (w_bytes + 2 * tm * input_dim * 4 + 2 * tm * 4
                + 2 * tm * hidden * 4)

    while tile_m > _LANE and _vmem_estimate(tile_m) > 20 * 1024 * 1024:
        tile_m = max(_LANE, _round_up(tile_m // 2, _LANE))

    B_full = _round_up(B_pad, tile_m)
    if B_full != B:
        # Padded rows compute tanh(b1)/tanh(...) on zeros — well-defined
        # values that are sliced off below.
        x = jnp.pad(x, ((0, B_full - B), (0, 0)))

    grid_m = B_full // tile_m
    g = tile_m // _LANE
    n_sub = 2 if tile_m % (2 * _LANE) == 0 else 1

    # Weights / biases: full array as one block with a constant index_map ->
    # DMA'd once, VMEM-resident for every grid step.
    # TODO(synk): add pipeline_mode=pl.Buffered(1) for the resident specs once
    # single-buffer pipelining is verified on the target jax version (saves a
    # full weight-set of VMEM at large hidden on v7x).
    def resident(a):
        return pl.BlockSpec(a.shape, lambda i: (0,) * a.ndim)

    w_itemsize = jnp.dtype(compute_dtype).itemsize
    cost = pl.CostEstimate(
        flops=2 * B_full * (input_dim * hidden + hidden * hidden + hidden),
        transcendentals=2 * B_full * hidden,
        bytes_accessed=(B_full * input_dim * 4                       # x (f32)
                        + (input_dim * hidden + hidden * hidden) * w_itemsize
                        + 2 * hidden * jnp.dtype(act_dtype).itemsize  # b1, b2
                        + (hidden + 1) * 4                            # w3, b3
                        + B_full * 4),                                # output
    )

    kernel = functools.partial(_mlp_kernel, n_sub=n_sub,
                               compute_dtype=compute_dtype,
                               act_dtype=act_dtype)

    out = pl.pallas_call(
        kernel,
        out_shape=jax.ShapeDtypeStruct((grid_m, g, _LANE), jnp.float32),
        grid_spec=pltpu.PrefetchScalarGridSpec(
            num_scalar_prefetch=0,
            grid=(grid_m,),
            in_specs=[
                pl.BlockSpec((tile_m, input_dim), lambda i: (i, 0)),   # x tile
                resident(w1), resident(b1),
                resident(w2), resident(b2),
                resident(w3), resident(b3),
            ],
            # Lane-dense output block: last dim 128, second-to-last = full dim.
            out_specs=pl.BlockSpec((1, g, _LANE), lambda i: (i, 0, 0)),
        ),
        compiler_params=pltpu.CompilerParams(
            dimension_semantics=("parallel",)),       # megacore sharding (v7x)
        cost_estimate=cost,
    )(x, w1, b1, w2, b2, w3, b3)

    # (grid, tile_m//128, 128) is exactly batch-row-major -> reshape back.
    return out.reshape(B_full, 1)[:B]


# ---------------------------------------------------------------------------
# Parameter init (matches weights_init_: xavier_uniform weights, zero biases)
# and a pure-JAX reference with the same dtype policy as the kernel.
# ---------------------------------------------------------------------------
def xavier_uniform(key, shape, fan_in, fan_out, gain=1.0):
    bound = gain * math.sqrt(6.0 / (fan_in + fan_out))
    return jax.random.uniform(key, shape, jnp.float32, -bound, bound)


def init_params(key, input_dim, hidden_dim):
    k1, k2, k3 = jax.random.split(key, 3)
    return {
        # w1/w2 stored (in, out); w3 stored (1, hidden) == torch linear3.weight.
        "w1": xavier_uniform(k1, (input_dim, hidden_dim), input_dim, hidden_dim),
        "b1": jnp.zeros((1, hidden_dim), jnp.float32),
        "w2": xavier_uniform(k2, (hidden_dim, hidden_dim), hidden_dim, hidden_dim),
        "b2": jnp.zeros((1, hidden_dim), jnp.float32),
        "w3": xavier_uniform(k3, (1, hidden_dim), hidden_dim, 1),
        "b3": jnp.zeros((1, 1), jnp.float32),
    }


def reference_forward(x, params, compute_dtype=jnp.float32, act_dtype=None):
    if act_dtype is None:
        act_dtype = _select_act_dtype(compute_dtype)
    w1 = params["w1"].astype(compute_dtype)
    w2 = params["w2"].astype(compute_dtype)
    b1 = params["b1"].astype(act_dtype)
    b2 = params["b2"].astype(act_dtype)
    h1 = jnp.dot(x.astype(compute_dtype), w1, preferred_element_type=jnp.float32)
    h1 = jnp.tanh(h1.astype(act_dtype) + b1)
    h2 = jnp.dot(h1.astype(compute_dtype), w2, preferred_element_type=jnp.float32)
    h2 = jnp.tanh(h2.astype(act_dtype) + b2)
    out = jnp.sum(h2.astype(jnp.float32) * params["w3"], axis=-1, keepdims=True)
    return out + params["b3"]


if __name__ == "__main__":
    key = jax.random.PRNGKey(0)
    k_param, k1, k2, k3 = jax.random.split(key, 4)

    input_dim = 24     # state_dim + action_dim (state_action concatenation)
    hidden_dim = 128   # small stand-in for the default 256
    params = init_params(k_param, input_dim, hidden_dim)

    # --- check 1: f32 path, tiny ragged batch (8 -> padded to 128, grid=1) ---
    x1 = jax.random.normal(k1, (8, input_dim), jnp.float32)
    out1 = jax.block_until_ready(
        discriminator_forward(x1, params, compute_dtype=jnp.float32))
    ref1 = reference_forward(x1, params, jnp.float32)
    assert out1.shape == (8, 1), out1.shape
    assert jnp.allclose(out1, ref1, atol=1e-5, rtol=1e-5), (
        f"f32 max err {jnp.max(jnp.abs(out1 - ref1))}")

    # --- check 2: bf16 MXU path, ragged batch 200 -> padded 256, grid=(2,) ---
    x2 = jax.random.normal(k2, (200, input_dim), jnp.float32)
    out2 = jax.block_until_ready(discriminator_forward(x2, params))
    ref2 = reference_forward(x2, params, jnp.bfloat16)
    ref2_f32 = reference_forward(x2, params, jnp.float32)
    assert out2.shape == (200, 1), out2.shape
    assert jnp.allclose(out2, ref2, atol=2e-2, rtol=2e-2), (
        f"bf16 max err {jnp.max(jnp.abs(out2 - ref2))}")
    assert jnp.allclose(out2, ref2_f32, atol=1e-1, rtol=1e-1), (
        f"bf16-vs-f32 max err {jnp.max(jnp.abs(out2 - ref2_f32))}")

    # --- check 3: sub-tile split (tile_m=256 -> n_sub=2), multi-step grid ---
    x3 = jax.random.normal(k3, (512, input_dim), jnp.float32)
    out3 = jax.block_until_ready(
        discriminator_forward(x3, params, tile_m=256))
    ref3 = reference_forward(x3, params, jnp.bfloat16)
    assert out3.shape == (512, 1), out3.shape
    assert jnp.allclose(out3, ref3, atol=2e-2, rtol=2e-2), (
        f"sub-tile max err {jnp.max(jnp.abs(out3 - ref3))}")

    print("KERNEL_OK")
</pallas_src>

<mosaic_0001>
module attributes {stable_mosaic.version = 11 : i64} {
  func.func @_mlp_kernel(%arg0: i32, %arg1: memref<128x24xf32, #tpu.memory_space<vmem>>, %arg2: memref<24x128xf32, #tpu.memory_space<vmem>>, %arg3: memref<1x128xf32, #tpu.memory_space<vmem>>, %arg4: memref<128x128xf32, #tpu.memory_space<vmem>>, %arg5: memref<1x128xf32, #tpu.memory_space<vmem>>, %arg6: memref<1x128xf32, #tpu.memory_space<vmem>>, %arg7: memref<1x1xf32, #tpu.memory_space<vmem>>, %arg8: memref<1x1x128xf32, #tpu.memory_space<vmem>>) attributes {dimension_semantics = [#tpu.dimension_semantics<parallel>], iteration_bounds = array<i64: 1>, scalar_prefetch = 0 : i64, scratch_operands = 0 : i64, tpu.core_type = #tpu.core_type<tc>, window_params = [{transform_indices = @transform_0, window_bounds = array<i64: 128, 24>}, {pipeline_mode = #tpu.pipeline_mode<synchronous>, transform_indices = @transform_1, window_bounds = array<i64: 24, 128>}, {pipeline_mode = #tpu.pipeline_mode<synchronous>, transform_indices = @transform_2, window_bounds = array<i64: 1, 128>}, {pipeline_mode = #tpu.pipeline_mode<synchronous>, transform_indices = @transform_3, window_bounds = array<i64: 128, 128>}, {pipeline_mode = #tpu.pipeline_mode<synchronous>, transform_indices = @transform_4, window_bounds = array<i64: 1, 128>}, {pipeline_mode = #tpu.pipeline_mode<synchronous>, transform_indices = @transform_5, window_bounds = array<i64: 1, 128>}, {pipeline_mode = #tpu.pipeline_mode<synchronous>, transform_indices = @transform_6, window_bounds = array<i64: 1, 1>}, {transform_indices = @transform_7, window_bounds = array<i64: 1, 1, 128>}]} {
    %c0 = arith.constant 0 : index
    %c0_0 = arith.constant 0 : index
    %0 = vector.load %arg2[%c0, %c0_0] : memref<24x128xf32, #tpu.memory_space<vmem>>, vector<24x128xf32>
    %c0_1 = arith.constant 0 : index
    %c0_2 = arith.constant 0 : index
    %1 = vector.load %arg3[%c0_1, %c0_2] : memref<1x128xf32, #tpu.memory_space<vmem>>, vector<1x128xf32>
    %c0_3 = arith.constant 0 : index
    %c0_4 = arith.constant 0 : index
    %2 = vector.load %arg4[%c0_3, %c0_4] : memref<128x128xf32, #tpu.memory_space<vmem>>, vector<128x128xf32>
    %c0_5 = arith.constant 0 : index
    %c0_6 = arith.constant 0 : index
    %3 = vector.load %arg5[%c0_5, %c0_6] : memref<1x128xf32, #tpu.memory_space<vmem>>, vector<1x128xf32>
    %c0_7 = arith.constant 0 : index
    %c0_8 = arith.constant 0 : index
    %4 = vector.load %arg6[%c0_7, %c0_8] : memref<1x128xf32, #tpu.memory_space<vmem>>, vector<1x128xf32>
    %5 = vector.shape_cast %4 : vector<1x128xf32> to vector<1x1x128xf32>
    %c0_9 = arith.constant 0 : index
    %c0_10 = arith.constant 0 : index
    %6 = vector.load %arg7[%c0_9, %c0_10] : memref<1x1xf32, #tpu.memory_space<vmem>>, vector<1x1xf32>
    %c0_11 = arith.constant 0 : index
    %c0_12 = arith.constant 0 : index
    %7 = vector.load %arg1[%c0_11, %c0_12] : memref<128x24xf32, #tpu.memory_space<vmem>>, vector<128x24xf32>
    %cst = arith.constant dense<0.000000e+00> : vector<128x128xf32>
    %8 = tpu.matmul %7, %0, %cst {dimension_numbers = #tpu.dot_dimension_numbers<[1], [0], [0], [1], [0, 0, 1, 1], [], []>} : vector<128x24xf32>, vector<24x128xf32>, vector<128x128xf32> -> vector<128x128xf32>
    %9 = vector.broadcast %1 : vector<1x128xf32> to vector<128x128xf32>
    %10 = arith.addf %8, %9 : vector<128x128xf32>
    %11 = math.tanh %10 : vector<128x128xf32>
    %cst_13 = arith.constant dense<0.000000e+00> : vector<128x128xf32>
    %12 = tpu.matmul %11, %2, %cst_13 {dimension_numbers = #tpu.dot_dimension_numbers<[1], [0], [0], [1], [0, 0, 1, 1], [], []>} : vector<128x128xf32>, vector<128x128xf32>, vector<128x128xf32> -> vector<128x128xf32>
    %13 = vector.broadcast %3 : vector<1x128xf32> to vector<128x128xf32>
    %14 = arith.addf %12, %13 : vector<128x128xf32>
    %15 = math.tanh %14 : vector<128x128xf32>
    %16 = vector.shape_cast %15 : vector<128x128xf32> to vector<1x128x128xf32>
    %17 = vector.broadcast %5 : vector<1x1x128xf32> to vector<1x128x128xf32>
    %18 = arith.mulf %16, %17 : vector<1x128x128xf32>
    %cst_14 = arith.constant dense<0.000000e+00> : vector<1x128xf32>
    %19 = vector.multi_reduction <add>, %18, %cst_14 [2] : vector<1x128x128xf32> to vector<1x128xf32>
    %20 = vector.broadcast %6 : vector<1x1xf32> to vector<1x128xf32>
    %21 = arith.addf %19, %20 : vector<1x128xf32>
    %c0_15 = arith.constant 0 : index
    %c0_16 = arith.constant 0 : index
    %c0_17 = arith.constant 0 : index
    %22 = vector.load %arg8[%c0_15, %c0_16, %c0_17] : memref<1x1x128xf32, #tpu.memory_space<vmem>>, vector<1x1x128xf32>
    %23 = vector.shape_cast %22 : vector<1x1x128xf32> to vector<1x128xf32>
    %24 = vector.shape_cast %21 : vector<1x128xf32> to vector<1x1x128xf32>
    tpu.vector_store %arg8[%c0_15, %c0_16, %c0_17], %24 {strides = array<i32>} : memref<1x1x128xf32, #tpu.memory_space<vmem>>, vector<1x1x128xf32>,
    return
  }
  func.func @transform_0(%arg0: i32) -> (i32, i32) {
    %c0_i32 = arith.constant 0 : i32
    %c0_i32_0 = arith.constant 0 : i32
    return %arg0, %c0_i32 : i32, i32
  }
  func.func @transform_1(%arg0: i32) -> (i32, i32) {
    %c0_i32 = arith.constant 0 : i32
    %c0_i32_0 = arith.constant 0 : i32
    %c0_i32_1 = arith.constant 0 : i32
    return %c0_i32, %c0_i32_0 : i32, i32
  }
  func.func @transform_2(%arg0: i32) -> (i32, i32) {
    %c0_i32 = arith.constant 0 : i32
    %c0_i32_0 = arith.constant 0 : i32
    %c0_i32_1 = arith.constant 0 : i32
    return %c0_i32, %c0_i32_0 : i32, i32
  }
  func.func @transform_3(%arg0: i32) -> (i32, i32) {
    %c0_i32 = arith.constant 0 : i32
    %c0_i32_0 = arith.constant 0 : i32
    %c0_i32_1 = arith.constant 0 : i32
    return %c0_i32, %c0_i32_0 : i32, i32
  }
  func.func @transform_4(%arg0: i32) -> (i32, i32) {
    %c0_i32 = arith.constant 0 : i32
    %c0_i32_0 = arith.constant 0 : i32
    %c0_i32_1 = arith.constant 0 : i32
    return %c0_i32, %c0_i32_0 : i32, i32
  }
  func.func @transform_5(%arg0: i32) -> (i32, i32) {
    %c0_i32 = arith.constant 0 : i32
    %c0_i32_0 = arith.constant 0 : i32
    %c0_i32_1 = arith.constant 0 : i32
    return %c0_i32, %c0_i32_0 : i32, i32
  }
  func.func @transform_6(%arg0: i32) -> (i32, i32) {
    %c0_i32 = arith.constant 0 : i32
    %c0_i32_0 = arith.constant 0 : i32
    %c0_i32_1 = arith.constant 0 : i32
    return %c0_i32, %c0_i32_0 : i32, i32
  }
  func.func @transform_7(%arg0: i32) -> (i32, i32, i32) {
    %c0_i32 = arith.constant 0 : i32
    %c0_i32_0 = arith.constant 0 : i32
    %c0_i32_1 = arith.constant 0 : i32
    return %arg0, %c0_i32, %c0_i32_0 : i32, i32, i32
  }
}

</mosaic_0001>

<bundles_post_ra>
// kernel: tpu_custom_call.1
= control target key start
LH: loop header
LB: loop body
LE: loop exit
PB: predicated region body
PF: predicated region fallthrough
CT: control target
= control target key end

     0   :  { %s1271_s0 = inlined_call_operand.vmem [shape: f32[128,24], index: 0, kind: input, shape index: {}]   ;;  %s1272_s1 = inlined_call_operand.vmem [shape: f32[24,128], index: 1, kind: input, shape index: {}]   ;;  %s1273_s2 = inlined_call_operand.vmem [shape: f32[1,128], index: 2, kind: input, shape index: {}]   ;;  %s1274_s3 = inlined_call_operand.vmem [shape: f32[128,128], index: 3, kind: input, shape index: {}]   ;;  %s1275_s4 = inlined_call_operand.vmem [shape: f32[1,128], index: 4, kind: input, shape index: {}]   ;;  %s1276_s5 = inlined_call_operand.vmem [shape: f32[1,128], index: 5, kind: input, shape index: {}]   ;;  %s1277_s6 = inlined_call_operand.<no memory space> [shape: f32[1,1], index: 6, kind: input, shape index: {}]   ;;  %s1278_s7 = inlined_call_operand.hbm [shape: f32[1,1,128], index: 7, kind: output, shape index: {}]  }
   0x1   :  { %v12_v0 = vstv %s1277_s6 }
   0x2   :  { %13 = vst [vmem:[#allocation2] sm:$0x1] %v12_v0 }
   0x3   :  { %v29_v1 = vld [vmem:[%s1272_s1] sm:$0xff]  ;;  %v30_v2 = vld [vmem:[%s1272_s1 + $0x8] sm:$0xff]  ;;  %vm74_vm0 = vcmask 195584   ;;  %v31_v5 = vld [vmem:[%s1272_s1 + $0x10] sm:$0xff] }
   0x4   :  { %v829_v3 = vpack.c.bf16 %v30_v2, %v29_v1  ;;  %v52_v4 = vld [vmem:[%s1271_s0] sm:$0xff]  ;;  %v53_v6 = vld [vmem:[%s1271_s0 + $0x8] sm:$0xff]  ;;  %v54_v9 = vld [vmem:[%s1271_s0 + $0x10] sm:$0xff] }
   0x5   :  { %749 = vmatprep.mubr.msk.f32.mxu0 %vm74_vm0, %v52_v4  ;;  %v33_v7 = vld [vmem:[%s1274_s3] sm:$0xff]  ;;  %v34_v8 = vld [vmem:[%s1274_s3 + $0x8] sm:$0xff]  ;;  %v35_v11 = vld [vmem:[%s1274_s3 + $0x10] sm:$0xff] }
   0x6   :  { %830 = vmatprep.subr.bf16.mxu0 %v829_v3  ;;  %v833_v10 = vpack.c.bf16 %v34_v8, %v33_v7  ;;  %v36_v12 = vld [vmem:[%s1274_s3 + $0x18] sm:$0xff]  ;;  %v37_v14 = vld [vmem:[%s1274_s3 + $0x20] sm:$0xff]  ;;  %v38_v15 = vld [vmem:[%s1274_s3 + $0x28] sm:$0xff] }
   0x7   :  { %832 = vmatpush3.bf16.msra.mxu0 %v829_v3  ;;  %v837_v13 = vpack.c.bf16 %v36_v12, %v35_v11 }
   0x8   :  { %747 = vmatprep.subr.mxu0 %v31_v5 }
   0xb   :  { %748 = vmatpush3.msra.mxu0 %v31_v5 }
   0xc   :  { %750 = vmatmul.mubr.msk.f32.vlgmr.msra.gmra.mrb[0].mxu0 %vm74_vm0, %v53_v6  ;;  %834 = vmatprep.subr.bf16.mxu0 %v833_v10 }
   0xd   :  { %14 = vsyncpa [#allocation4], 0  ;;  %752 = vmatprep.mubr.msk.f32.mxu0 %vm74_vm0, %v54_v9  ;;  %v55_v16 = vld [vmem:[%s1271_s0 + $0x18] sm:$0xff]  ;;  %836 = vmatpush3.bf16.msra.mxu0 %v833_v10  ;;  %v56_v17 = vld [vmem:[%s1271_s0 + $0x20] sm:$0xff]  ;;  %v841_v18 = vpack.c.bf16 %v38_v15, %v37_v14  ;;  %vm557_vm1 = vcmask 130112   ;;  %vm564_vm2 = vcmask 195712  }
   0xe   :  { %838 = vmatprep.subr.bf16.mxu0 %v837_v13  ;;  %865 = vmatprep.subr.bf16.mxu1 %v833_v10  ;;  %v39_v19 = vld [vmem:[%s1274_s3 + $0x30] sm:$0xff]  ;;  %v40_v20 = vld [vmem:[%s1274_s3 + $0x38] sm:$0xff]  ;;  %v57_v21 = vld [vmem:[%s1271_s0 + $0x28] sm:$0xff]  ;;  %vm571_vm3 = vcmask 261312   ;;  %vm578_vm4 = vcmask 326912   ;;  %vm585_vm5 = vcmask 392512  }
   0xf   :  { %873 = vmatpush3.bf16.msra.mxu1 %v833_v10  ;;  %v58_v22 = vld [vmem:[%s1271_s0 + $0x30] sm:$0xff]  ;;  %v845_v23 = vpack.c.bf16 %v40_v20, %v39_v19  ;;  %v41_v24 = vld [vmem:[%s1274_s3 + $0x40] sm:$0xff]  ;;  %v42_v25 = vld [vmem:[%s1274_s3 + $0x48] sm:$0xff]  ;;  %vm592_vm6 = vcmask 458112   ;;  %vm599_vm7 = vcmask 523712   ;;  %vm606_vm8 = vcmask 589312  }
  0x10   :  { %753 = vmatmul.mubr.msk.f32.gmra.mrb[2].mxu0 %vm74_vm0, %v55_v16  ;;  %866 = vmatprep.subr.bf16.mxu1 %v837_v13  ;;  %v59_v26 = vld [vmem:[%s1271_s0 + $0x38] sm:$0xff]  ;;  %v60_v27 = vld [vmem:[%s1271_s0 + $0x40] sm:$0xff]  ;;  %v849_v28 = vpack.c.bf16 %v42_v25, %v41_v24  ;;  %v61_v29 = vld [vmem:[%s1271_s0 + $0x48] sm:$0xff]  ;;  %vm613_vm9 = vcmask 654912   ;;  %vm620_vm10 = vcmask 720512   ;;  %vm627_vm11 = vcmask 786112  }
  0x11   :  { %755 = vmatprep.mubr.msk.f32.mxu0 %vm74_vm0, %v56_v17  ;;  %840 = vmatpush3.bf16.msra.mxu0 %v837_v13  ;;  %v62_v30 = vld [vmem:[%s1271_s0 + $0x50] sm:$0xff]  ;;  %v63_v31 = vld [vmem:[%s1271_s0 + $0x58] sm:$0xff]  ;;  %v64_v32 = vld [vmem:[%s1271_s0 + $0x60] sm:$0xff]  ;;  %vm634_vm12 = vcmask 851712   ;;  %vm641_vm13 = vcmask 917312   ;;  %vm648_vm14 = vcmask 982912  }
  0x12   :  { %842 = vmatprep.subr.bf16.mxu0 %v841_v18  ;;  %v65_v33 = vld [vmem:[%s1271_s0 + $0x68] sm:$0xff]  ;;  %v66_v34 = vld [vmem:[%s1271_s0 + $0x70] sm:$0xff]  ;;  %v67_v35 = vld [vmem:[%s1271_s0 + $0x78] sm:$0xff]  ;;  %vm655_vm15 = vcmask 1048512  }
  0x13   :  { %874 = vmatpush3.bf16.msra.mxu1 %v837_v13  ;;  %v43_v36 = vld [vmem:[%s1274_s3 + $0x50] sm:$0xff]  ;;  %v44_v37 = vld [vmem:[%s1274_s3 + $0x58] sm:$0xff]  ;;  %v45_v39 = vld [vmem:[%s1274_s3 + $0x60] sm:$0xff] }
  0x14   :  { %756 = vmatmul.mubr.msk.f32.gmra.mrb[4].mxu0 %vm74_vm0, %v57_v21  ;;  %867 = vmatprep.subr.bf16.mxu1 %v841_v18  ;;  %v853_v38 = vpack.c.bf16 %v44_v37, %v43_v36  ;;  %v46_v40 = vld [vmem:[%s1274_s3 + $0x68] sm:$0xff]  ;;  %v47_v42 = vld [vmem:[%s1274_s3 + $0x70] sm:$0xff]  ;;  %v48_v43 = vld [vmem:[%s1274_s3 + $0x78] sm:$0xff] }
  0x15   :  { %758 = vmatprep.mubr.msk.f32.mxu0 %vm74_vm0, %v58_v22  ;;  %844 = vmatpush3.bf16.msra.mxu0 %v841_v18  ;;  %v857_v41 = vpack.c.bf16 %v46_v40, %v45_v39  ;;  %v861_v44 = vpack.c.bf16 %v48_v43, %v47_v42  ;;  %v1142_v45 = vld [vmem:[%s1273_s2] ss:$0 sm:$0xff] }
  0x16   :  { %846 = vmatprep.subr.bf16.mxu0 %v845_v23 }
  0x17   :  { %875 = vmatpush3.bf16.msra.mxu1 %v841_v18 }
  0x18   :  { %759 = vmatmul.mubr.msk.f32.gmra.mrb[6].mxu0 %vm74_vm0, %v59_v26  ;;  %868 = vmatprep.subr.bf16.mxu1 %v845_v23 }
  0x19   :  { %761 = vmatprep.mubr.msk.f32.mxu0 %vm74_vm0, %v60_v27  ;;  %848 = vmatpush3.bf16.msra.mxu0 %v845_v23 }
  0x1a   :  { %850 = vmatprep.subr.bf16.mxu0 %v849_v28 }
  0x1b   :  { %876 = vmatpush3.bf16.msra.mxu1 %v845_v23 }
  0x1c   :  { %762 = vmatmul.mubr.msk.f32.gmra.mrb[8].mxu0 %vm74_vm0, %v61_v29  ;;  %869 = vmatprep.subr.bf16.mxu1 %v849_v28 }
  0x1d   :  { %764 = vmatprep.mubr.msk.f32.mxu0 %vm74_vm0, %v62_v30  ;;  %852 = vmatpush3.bf16.msra.mxu0 %v849_v28  ;;  %v973_v30 = vmov 0  }
  0x1e   :  { %854 = vmatprep.subr.bf16.mxu0 %v853_v38  ;;  %883 = vset.pattern.permute.xlu1 %v973_v30 }
  0x1f   :  { %877 = vmatpush3.bf16.msra.mxu1 %v849_v28  ;;  %884 = vset.pattern.permute.xlu0 %v973_v30 }
  0x20   :  { %765 = vmatmul.mubr.msk.f32.gmra.mrb[10].mxu0 %vm74_vm0, %v63_v31  ;;  %870 = vmatprep.subr.bf16.mxu1 %v853_v38  ;;  %v1163_v31 = vld [vmem:[%s1275_s4] ss:$0 sm:$0xff] }
  0x21   :  { %767 = vmatprep.mubr.msk.f32.mxu0 %vm74_vm0, %v64_v32  ;;  %856 = vmatpush3.bf16.msra.mxu0 %v853_v38 }
  0x22   :  { %858 = vmatprep.subr.bf16.mxu0 %v857_v41 }
  0x23   :  { %878 = vmatpush3.bf16.msra.mxu1 %v853_v38 }
  0x24   :  { %768 = vmatmul.mubr.msk.f32.gmra.mrb[12].mxu0 %vm74_vm0, %v65_v33  ;;  %871 = vmatprep.subr.bf16.mxu1 %v857_v41 }
  0x25   :  { %770 = vmatprep.mubr.msk.f32.mxu0 %vm74_vm0, %v66_v34  ;;  %860 = vmatpush3.bf16.msra.mxu0 %v857_v41 }
  0x26   :  { %862 = vmatprep.subr.bf16.mxu0 %v861_v44 }
  0x27   :  { %879 = vmatpush3.bf16.msra.mxu1 %v857_v41 }
  0x28   :  { %771 = vmatmul.mubr.msk.f32.gmra.mrb[14].mxu0 %vm74_vm0, %v67_v35  ;;  %872 = vmatprep.subr.bf16.mxu1 %v861_v44 }
  0x29   :  { %864 = vmatpush3.bf16.msra.mxu0 %v861_v44 }
  0x2b   :  { %880 = vmatpush3.bf16.msra.mxu1 %v861_v44  ;;  %v1174_v44 = vld [vmem:[%s1276_s5] ss:$0 sm:$0xff]  ;;  %s974_s5 = smov [#allocation3]  }
  0x2c   :  { %s665_s23 = sshll.u32 %s974_s5, 4  ;;  %s666_s23 = int_to_ptr.vmem [resolvable:$true] %s665_s23 }
  0x2d   :  { %s949_s24 = scalar_lea.vmem %s666_s23, 16  ;;  %s953_s25 = scalar_lea.vmem %s666_s23, 32 }
  0x2e   :  { %p950_p0 = scmp.ne.s32.totalorder %s666_s23, %s949_s24  ;;  %p954_p1 = scmp.lt.s32.totalorder %s666_s23, %s666_s23 }
  0x2f   :  { %p955_p2 = scmp.lt.s32.totalorder %s953_s25, %s949_s24 }
  0x31   :  { %p956_p3 = por %p955_p2, %p954_p1 }
  0x33   :  { %p957_p4 = pnand %p956_p3, %p950_p0 }
  0xdf   :  { %v751_v46 = vpop.f32.mrb[0].mxu0 }
  0xe0   :  { %v195_v47 = vadd.f32 %v751_v46, %v1142_v45  ;;  %v189_v48 = vpop.f32.mrb[1].mxu0 }
  0xe1   :  { %v190_v49 = vadd.f32 %v1142_v45, %v189_v48 }
  0xe3   :  { %885 = vtanh.f32 %v190_v49  ;;  %v754_v50 = vpop.f32.mrb[2].mxu0 }
  0xe4   :  { %887 = vtanh.f32 %v195_v47  ;;  %v205_v51 = vadd.f32 %v754_v50, %v1142_v45  ;;  %v199_v52 = vpop.f32.mrb[3].mxu0 }
  0xe5   :  { %v200_v53 = vadd.f32 %v1142_v45, %v199_v52 }
  0xe7   :  { %889 = vtanh.f32 %v200_v53  ;;  %v757_v54 = vpop.f32.mrb[4].mxu0 }
  0xe8   :  { %891 = vtanh.f32 %v205_v51  ;;  %v215_v55 = vadd.f32 %v757_v54, %v1142_v45  ;;  %v209_v56 = vpop.f32.mrb[5].mxu0 }
  0xe9   :  { %v210_v57 = vadd.f32 %v1142_v45, %v209_v56 }
  0xea   :  { %893 = vtanh.f32 %v215_v55 }
  0xeb   :  { %895 = vtanh.f32 %v210_v57  ;;  %v760_v58 = vpop.f32.mrb[6].mxu0 }
  0xec   :  { %v225_v59 = vadd.f32 %v760_v58, %v1142_v45  ;;  %v219_v60 = vpop.f32.mrb[7].mxu0 }
  0xed   :  { %v886_v61 = vpop.eup %885  ;;  %v220_v62 = vadd.f32 %v1142_v45, %v219_v60 }
  0xee   :  { %v888_v63 = vpop.eup %887  ;;  %897 = vtanh.f32 %v225_v59  ;;  %805 = vmatprep.mubr.f32.mxu0 %v886_v61 }
  0xef   :  { %899 = vtanh.f32 %v220_v62  ;;  %806 = vmatmul.mubr.f32.vlgmr.msra.gmra.mrb[16].mxu0 %v888_v63  ;;  %v763_v0 = vpop.f32.mrb[8].mxu0 }
  0xf0   :  { %v235_v1 = vadd.f32 %v763_v0, %v1142_v45  ;;  %v229_v2 = vpop.f32.mrb[9].mxu0 }
  0xf1   :  { %v890_v3 = vpop.eup %889  ;;  %v230_v4 = vadd.f32 %v1142_v45, %v229_v2 }
  0xf2   :  { %v892_v5 = vpop.eup %891  ;;  %808 = vmatprep.mubr.f32.mxu0 %v890_v3  ;;  %901 = vtanh.f32 %v235_v1 }
  0xf3   :  { %809 = vmatmul.mubr.f32.gmra.mrb[18].mxu0 %v892_v5  ;;  %903 = vtanh.f32 %v230_v4  ;;  %v766_v6 = vpop.f32.mrb[10].mxu0 }
  0xf4   :  { %v894_v7 = vpop.eup %893  ;;  %v245_v8 = vadd.f32 %v766_v6, %v1142_v45  ;;  %v239_v9 = vpop.f32.mrb[11].mxu0 }
  0xf5   :  { %v896_v10 = vpop.eup %895  ;;  %v240_v11 = vadd.f32 %v1142_v45, %v239_v9 }
  0xf6   :  { %811 = vmatprep.mubr.f32.mxu0 %v896_v10  ;;  %905 = vtanh.f32 %v245_v8 }
  0xf7   :  { %812 = vmatmul.mubr.f32.gmra.mrb[20].mxu0 %v894_v7  ;;  %907 = vtanh.f32 %v240_v11  ;;  %v769_v12 = vpop.f32.mrb[12].mxu0 }
  0xf8   :  { %v898_v13 = vpop.eup %897  ;;  %v255_v14 = vadd.f32 %v769_v12, %v1142_v45  ;;  %v249_v15 = vpop.f32.mrb[13].mxu0 }
  0xf9   :  { %v900_v16 = vpop.eup %899  ;;  %v250_v17 = vadd.f32 %v1142_v45, %v249_v15 }
  0xfa   :  { %814 = vmatprep.mubr.f32.mxu1 %v900_v16  ;;  %909 = vtanh.f32 %v255_v14 }
  0xfb   :  { %815 = vmatmul.mubr.f32.vlgmr.msra.gmra.mrb[0].mxu1 %v898_v13  ;;  %911 = vtanh.f32 %v250_v17  ;;  %v772_v18 = vpop.f32.mrb[14].mxu0 }
  0xfc   :  { %v902_v19 = vpop.eup %901  ;;  %v265_v20 = vadd.f32 %v772_v18, %v1142_v45  ;;  %v259_v21 = vpop.f32.mrb[15].mxu0 }
  0xfd   :  { %v904_v22 = vpop.eup %903  ;;  %v260_v23 = vadd.f32 %v1142_v45, %v259_v21 }
  0xfe   :  { %817 = vmatprep.mubr.f32.mxu1 %v904_v22  ;;  %913 = vtanh.f32 %v265_v20 }
  0xff   :  { %818 = vmatmul.mubr.f32.gmra.mrb[2].mxu1 %v902_v19  ;;  %915 = vtanh.f32 %v260_v23 }
 0x100   :  { %v906_v24 = vpop.eup %905 }
 0x101   :  { %v908_v25 = vpop.eup %907 }
 0x102   :  { %820 = vmatprep.mubr.f32.mxu1 %v908_v25 }
 0x103   :  { %821 = vmatmul.mubr.f32.gmra.mrb[4].mxu1 %v906_v24 }
 0x104   :  { %v910_v26 = vpop.eup %909 }
 0x105   :  { %v912_v27 = vpop.eup %911 }
 0x106   :  { %823 = vmatprep.mubr.f32.mxu1 %v912_v27 }
 0x107   :  { %824 = vmatmul.mubr.f32.gmra.mrb[6].mxu1 %v910_v26  ;;  %v51_v26 = vld [vmem:[#allocation2] sm:$0x1] }
 0x108   :  { %v914_v28 = vpop.eup %913 }
 0x109   :  { %v916_v29 = vpop.eup %915 }
 0x10a   :  { %826 = vmatprep.mubr.f32.mxu1 %v916_v29 }
 0x10b   :  { %827 = vmatmul.mubr.f32.gmra.mrb[8].mxu1 %v914_v28 }
 0x1c2   :  { %v807_v32 = vpop.f32.mrb[16].mxu0 }
 0x1c3   :  { %v362_v33 = vadd.f32 %v807_v32, %v1163_v31  ;;  %v356_v34 = vpop.f32.mrb[17].mxu0 }
 0x1c4   :  { %v357_v35 = vadd.f32 %v1163_v31, %v356_v34 }
 0x1c5   :  { %917 = vtanh.f32 %v362_v33 }
 0x1c6   :  { %v810_v36 = vpop.f32.mrb[18].mxu0  ;;  %919 = vtanh.f32 %v357_v35 }
 0x1c7   :  { %v372_v37 = vadd.f32 %v810_v36, %v1163_v31  ;;  %v366_v38 = vpop.f32.mrb[19].mxu0 }
 0x1c8   :  { %v367_v39 = vadd.f32 %v1163_v31, %v366_v38 }
 0x1c9   :  { %921 = vtanh.f32 %v372_v37 }
 0x1ca   :  { %v813_v40 = vpop.f32.mrb[20].mxu0  ;;  %923 = vtanh.f32 %v367_v39 }
 0x1cb   :  { %v382_v41 = vadd.f32 %v813_v40, %v1163_v31  ;;  %v376_v42 = vpop.f32.mrb[21].mxu0  ;;  %v510_v40 = vlaneseq }
 0x1cc   :  { %v377_v43 = vadd.f32 %v1163_v31, %v376_v42 }
 0x1ce   :  { %925 = vtanh.f32 %v377_v43  ;;  %v816_v45 = vpop.f32.mrb[0].mxu1  ;;  %v1202_v43 = vshrl.u32 %v510_v40, 7 }
 0x1cf   :  { %v918_v46 = vpop.eup %917  ;;  %927 = vtanh.f32 %v382_v41  ;;  %v392_v47 = vadd.f32 %v816_v45, %v1163_v31  ;;  %v386_v48 = vpop.f32.mrb[1].mxu1 }
 0x1d0   :  { %v458_v49 = vmul.f32 %v918_v46, %v1174_v44  ;;  %v387_v50 = vadd.f32 %v1163_v31, %v386_v48  ;;  %v920_v51 = vpop.eup %919  ;;  %v512_v45 = vsub.s32 0, %v1202_v43  ;;  %v1205_v46 = vand.u32 127, %v510_v40 }
 0x1d1   :  { %929 = vtanh.f32 %v392_v47  ;;  %v457_v57 = vmul.f32 %v920_v51, %v1174_v44 }
 0x1d2   :  { %475 = vadd.xlane.f32.xlu0 %v458_v49  ;;  %931 = vtanh.f32 %v387_v50  ;;  %v819_v52 = vpop.f32.mrb[2].mxu1  ;;  %v552_v49 = vadd.s32 4294967288, %v1205_v46  ;;  %v559_v50 = vadd.s32 4294967280, %v1205_v46  ;;  %v636_v40 = vadd.s32 4294967192, %v1205_v46 }
 0x1d3   :  { %v922_v53 = vpop.eup %921  ;;  %v402_v54 = vadd.f32 %v819_v52, %v1163_v31  ;;  %v396_v55 = vpop.f32.mrb[3].mxu1 }
 0x1d4   :  { %v460_v56 = vmul.f32 %v922_v53, %v1174_v44  ;;  %v924_v58 = vpop.eup %923  ;;  %v397_v59 = vadd.f32 %v1163_v31, %v396_v55  ;;  %v555_v55 = vsub.s32 %v552_v49, %v1202_v43 }
 0x1d5   :  { %933 = vtanh.f32 %v402_v54  ;;  %v459_v0 = vmul.f32 %v924_v58, %v1174_v44  ;;  %v550_v54 = vsub.s32 %v1205_v46, %v1202_v43 }
 0x1d6   :  { %479 = vadd.xlane.f32.xlu1 %v460_v56  ;;  %473 = vadd.xlane.f32.xlu0 %v457_v57  ;;  %v822_v60 = vpop.f32.mrb[4].mxu1  ;;  %v562_v57 = vsub.s32 %v559_v50, %v1202_v43 }
 0x1d7   :  { %v412_v61 = vadd.f32 %v822_v60, %v1163_v31  ;;  %v406_v62 = vpop.f32.mrb[5].mxu1  ;;  %v566_v60 = vadd.s32 4294967272, %v1205_v46 }
 0x1d8   :  { %v926_v63 = vpop.eup %925  ;;  %v407_v3 = vadd.f32 %v1163_v31, %v406_v62 }
 0x1d9   :  { %v928_v1 = vpop.eup %927  ;;  %v461_v2 = vmul.f32 %v926_v63, %v1174_v44  ;;  %935 = vtanh.f32 %v412_v61  ;;  %v573_v63 = vadd.s32 4294967264, %v1205_v46 }
 0x1da   :  { %477 = vadd.xlane.f32.xlu1 %v459_v0  ;;  %937 = vtanh.f32 %v397_v59  ;;  %v825_v4 = vpop.f32.mrb[6].mxu1  ;;  %v462_v8 = vmul.f32 %v928_v1, %v1174_v44 }
 0x1db   :  { %v930_v5 = vpop.eup %929  ;;  %481 = vadd.xlane.f32.xlu0 %v461_v2  ;;  %v416_v6 = vpop.f32.mrb[7].mxu1  ;;  %939 = vtanh.f32 %v407_v3  ;;  %v422_v10 = vadd.f32 %v825_v4, %v1163_v31  ;;  %v569_v2 = vsub.s32 %v566_v60, %v1202_v43  ;;  %v580_v3 = vadd.s32 4294967256, %v1205_v46 }
 0x1dc   :  { %v932_v7 = vpop.eup %931  ;;  %v464_v9 = vmul.f32 %v930_v5, %v1174_v44  ;;  %v417_v15 = vadd.f32 %v1163_v31, %v416_v6  ;;  %v576_v6 = vsub.s32 %v573_v63, %v1202_v43 }
 0x1dd   :  { %v463_v12 = vmul.f32 %v932_v7, %v1174_v44  ;;  %941 = vtanh.f32 %v422_v10 }
 0x1de   :  { %483 = vadd.xlane.f32.xlu1 %v462_v8  ;;  %v828_v11 = vpop.f32.mrb[8].mxu1  ;;  %943 = vtanh.f32 %v417_v15  ;;  %v594_v15 = vadd.s32 4294967240, %v1205_v46 }
 0x1df   :  { %487 = vadd.xlane.f32.xlu0 %v464_v9  ;;  %v426_v13 = vpop.f32.mrb[9].mxu1  ;;  %v934_v14 = vpop.eup %933  ;;  %v432_v23 = vadd.f32 %v828_v11, %v1163_v31  ;;  %v587_v9 = vadd.s32 4294967248, %v1205_v46 }
 0x1e0   :  { %v466_v17 = vmul.f32 %v934_v14, %v1174_v44  ;;  %v427_v20 = vadd.f32 %v1163_v31, %v426_v13 }
 0x1e1   :  { %v590_v14 = vsub.s32 %v587_v9, %v1202_v43 }
 0x1e2   :  { %945 = vtanh.f32 %v427_v20 }
 0x1e3   :  { %v936_v16 = vpop.eup %935  ;;  %485 = vadd.xlane.f32.xlu0 %v463_v12  ;;  %947 = vtanh.f32 %v432_v23  ;;  %v583_v12 = vsub.s32 %v580_v3, %v1202_v43 }
 0x1e4   :  { %v938_v18 = vpop.eup %937  ;;  %v468_v19 = vmul.f32 %v936_v16, %v1174_v44 }
 0x1e5   :  { %v465_v21 = vmul.f32 %v938_v18, %v1174_v44  ;;  %v940_v22 = vpop.eup %939  ;;  %v601_v18 = vadd.s32 4294967232, %v1205_v46 }
 0x1e6   :  { %v467_v24 = vmul.f32 %v940_v22, %v1174_v44 }
 0x1e7   :  { %491 = vadd.xlane.f32.xlu0 %v466_v17  ;;  %v942_v25 = vpop.eup %941 }
 0x1e8   :  { %v470_v27 = vmul.f32 %v942_v25, %v1174_v44  ;;  %v944_v28 = vpop.eup %943 }
 0x1e9   :  { %v469_v29 = vmul.f32 %v944_v28, %v1174_v44  ;;  %v615_v28 = vadd.s32 4294967216, %v1205_v46 }
 0x1eb   :  { %489 = vadd.xlane.f32.xlu0 %v465_v21  ;;  %v608_v21 = vadd.s32 4294967224, %v1205_v46 }
 0x1ec   :  { %v946_v30 = vpop.eup %945 }
 0x1ed   :  { %v471_v32 = vmul.f32 %v946_v30, %v1174_v44  ;;  %v948_v31 = vpop.eup %947 }
 0x1ee   :  { %v472_v33 = vmul.f32 %v948_v31, %v1174_v44 }
 0x1ef   :  { %507 = vperm.xlu1 %883, %v51_v26   ;;  %493 = vadd.xlane.f32.xlu0 %v467_v24  ;;  %v597_v24 = vsub.s32 %v594_v15, %v1202_v43  ;;  %v604_v26 = vsub.s32 %v601_v18, %v1202_v43 }
 0x1f3   :  { %499 = vadd.xlane.f32.xlu0 %v470_v27 }
 0x1f7   :  { %497 = vadd.xlane.f32.xlu0 %v469_v29 }
 0x1fb   :  { %501 = vadd.xlane.f32.xlu0 %v471_v32  ;;  %v611_v32 = vsub.s32 %v608_v21, %v1202_v43 }
 0x1ff   :  { %503 = vadd.xlane.f32.xlu0 %v472_v33  ;;  %v622_v33 = vadd.s32 4294967208, %v1205_v46 }
 0x213   :  { %495 = vadd.xlane.f32.xlu1 %v468_v19 }
 0x25f   :  { %v476_v34 = vpop.xlane.xlu0 %475 }
 0x263   :  { %v474_v35 = vpop.xlane.xlu0 %473  ;;  %v480_v36 = vpop.xlane.xlu1 %479 }
 0x267   :  { %v478_v38 = vpop.xlane.xlu1 %477 }
 0x268   :  { %v482_v37 = vpop.xlane.xlu0 %481 }
 0x26b   :  { %v484_v41 = vpop.xlane.xlu1 %483 }
 0x26c   :  { %v488_v39 = vpop.xlane.xlu0 %487 }
 0x26f   :  { %v508_v47 = vpop.permute.xlu1 %507 }
 0x270   :  { %v486_v42 = vpop.xlane.xlu0 %485  ;;  %v1207_v44 = vrot.slane %v508_v47, %v512_v45  ;;  %v625_v45 = vsub.s32 %v622_v33, %v1202_v43 }
 0x272   :  { %v514_v52 = vadd.f32 %v1207_v44, %v474_v35  ;;  %v515_v53 = vadd.f32 %v1207_v44, %v476_v34  ;;  %v516_v56 = vadd.f32 %v1207_v44, %v478_v38  ;;  %v517_v0 = vadd.f32 %v1207_v44, %v480_v36 }
 0x273   :  { %v518_v4 = vadd.f32 %v1207_v44, %v482_v37  ;;  %v519_v10 = vadd.f32 %v1207_v44, %v484_v41  ;;  %v520_v17 = vadd.f32 %v1207_v44, %v486_v42  ;;  %v521_v23 = vadd.f32 %v1207_v44, %v488_v39 }
 0x274   :  { %v492_v48 = vpop.xlane.xlu0 %491  ;;  %v551_v58 = vrot.slane %v514_v52, %v550_v54  ;;  %v556_v59 = vrot.slane %v515_v53, %v555_v55  ;;  %v563_v62 = vrot.slane %v516_v56, %v562_v57  ;;  %v570_v8 = vrot.slane %v517_v0, %v569_v2 }
 0x275   :  { %v577_v13 = vrot.slane %v518_v4, %v576_v6  ;;  %v584_v20 = vrot.slane %v519_v10, %v583_v12  ;;  %v591_v25 = vrot.slane %v520_v17, %v590_v14  ;;  %v598_v31 = vrot.slane %v521_v23, %v597_v24 }
 0x276   :  { %v558_v1 = vsel %vm557_vm1, %v556_v59, %v551_v58  ;;  %v618_v35 = vsub.s32 %v615_v28, %v1202_v43  ;;  %v629_v37 = vadd.s32 4294967200, %v1205_v46  ;;  %v523_v38 = vadd.f32 %v1207_v44, %v492_v48 }
 0x277   :  { %v565_v5 = vsel %vm564_vm2, %v563_v62, %v558_v1  ;;  %v643_v41 = vadd.s32 4294967184, %v1205_v46  ;;  %v650_v42 = vadd.s32 4294967176, %v1205_v46  ;;  %v639_v54 = vsub.s32 %v636_v40, %v1202_v43 }
 0x278   :  { %v490_v51 = vpop.xlane.xlu0 %489  ;;  %v572_v11 = vsel %vm571_vm3, %v570_v8, %v565_v5  ;;  %v632_v50 = vsub.s32 %v629_v37, %v1202_v43  ;;  %v612_v53 = vrot.slane %v523_v38, %v611_v32 }
 0x279   :  { %v579_v16 = vsel %vm578_vm4, %v577_v13, %v572_v11  ;;  %v522_v27 = vadd.f32 %v1207_v44, %v490_v51  ;;  %v646_v46 = vsub.s32 %v643_v41, %v1202_v43  ;;  %v653_v58 = vsub.s32 %v650_v42, %v1202_v43 }
 0x27a   :  { %v586_v22 = vsel %vm585_vm5, %v584_v20, %v579_v16 }
 0x27b   :  { %v593_v29 = vsel %vm592_vm6, %v591_v25, %v586_v22  ;;  %v605_v34 = vrot.slane %v522_v27, %v604_v26 }
 0x27c   :  { %v494_v61 = vpop.xlane.xlu0 %493  ;;  %v600_v39 = vsel %vm599_vm7, %v598_v31, %v593_v29 }
 0x27d   :  { %v524_v36 = vadd.f32 %v1207_v44, %v494_v61  ;;  %v607_v47 = vsel %vm606_vm8, %v605_v34, %v600_v39 }
 0x27e   :  { %v614_v59 = vsel %vm613_vm9, %v612_v53, %v607_v47 }
 0x27f   :  { %v619_v49 = vrot.slane %v524_v36, %v618_v35 }
 0x280   :  { %v500_v7 = vpop.xlane.xlu0 %499 }
 0x281   :  { %v527_v55 = vadd.f32 %v1207_v44, %v500_v7  ;;  %v621_v62 = vsel %vm620_vm10, %v619_v49, %v614_v59 }
 0x283   :  { %v640_v0 = vrot.slane %v527_v55, %v639_v54 }
 0x284   :  { %v498_v19 = vpop.xlane.xlu0 %497 }
 0x285   :  { %v526_v51 = vadd.f32 %v1207_v44, %v498_v19 }
 0x287   :  { %v633_v63 = vrot.slane %v526_v51, %v632_v50 }
 0x288   :  { %v502_v30 = vpop.xlane.xlu0 %501 }
 0x289   :  { %v528_v57 = vadd.f32 %v1207_v44, %v502_v30 }
 0x28b   :  { %v647_v2 = vrot.slane %v528_v57, %v646_v46 }
 0x28c   :  { %v504_v52 = vpop.xlane.xlu0 %503 }
 0x28d   :  { %v529_v60 = vadd.f32 %v1207_v44, %v504_v52 }
 0x28f   :  { %v654_v43 = vrot.slane %v529_v60, %v653_v58 }
 0x2a0   :  { %v496_v48 = vpop.xlane.xlu1 %495 }
 0x2a1   :  { %v525_v56 = vadd.f32 %v1207_v44, %v496_v48 }
 0x2a3   :  { %v626_v61 = vrot.slane %v525_v56, %v625_v45 }
 0x2a5   :  { %v628_v1 = vsel %vm627_vm11, %v626_v61, %v621_v62 }
 0x2a6   :  { %v635_v3 = vsel %vm634_vm12, %v633_v63, %v628_v1 }
 0x2a7   :  { %v642_v4 = vsel %vm641_vm13, %v640_v0, %v635_v3 }
 0x2a8   :  { %v649_v5 = vsel %vm648_vm14, %v647_v2, %v642_v4 }
 0x2a9   :  { %v656_v6 = vsel %vm655_vm15, %v654_v43, %v649_v5 }
 0x2aa   :  { %658 = vst [vmem:[#allocation3] sm:$0x1] %v656_v6 }
 0x2ab   :  { %960 = shalt.err (!%p957_p4)
}
 0x2ac   :  { %s961_s28 = scalar_lea.hbm %s1278_s7, 16 }
 0x2ad   :  { %p962_p5 = scmp.ne.s32.totalorder %s1278_s7, %s961_s28  ;;  %p965_p6 = scmp.lt.u32.totalorder %s961_s28, %s1278_s7 }
 0x2af   :  { %p967_p7 = pnand %p965_p6, %p962_p5 }
 0x2b1   :  { %970 = shalt.err (!%p967_p7)
}
 0x2b2   :  { %668 = dma.vmem_to_hbm [thread:$0]  %s666_s23, 16, %s1278_s7, [#allocation4]  }
 0x2b3   :  { %971 = dma.done.wait [#allocation4], 16  }
 0x2b4   :  { %972 = vsyncadd [#allocation4], 4294967280 }
 0x2b5   :  { %672 = vsyncpa [#allocation4], 1 }

</bundles_post_ra>
